<compile_context>
chip_gen: v5e
topology: v5e:2x2
jax: 0.10.0
libtpu: 0.0.40
codegen_flags: <defaults>
</compile_context>

<pallas_src>
import math
import functools

import jax
import jax.numpy as jnp
from jax import lax
from jax.experimental import pallas as pl
from jax.experimental.pallas import tpu as pltpu

NDIM = 128
DIM = NDIM // 2            # 64
N_CLASSES = 2
HEADS = 8
DIM_HEAD = DIM // 8        # 8
LANDMARKS = DIM // 2       # 32
PINV_ITERS = 6
RES_KERNEL = 33            # NystromAttention residual_conv_kernel default
LN_EPS = 1e-5


@functools.lru_cache(maxsize=1)
def _vmem_limit_bytes():
    # Generation-dependent scoped-VMEM request (v7x has only 64 MiB physical).
    try:
        cap = int(pltpu.get_tpu_info().vmem_capacity_bytes)
    except Exception:
        cap = 64 * 1024 * 1024
    return int(min(cap // 2, 48 * 1024 * 1024))


# ----------------------------- Pallas kernels -----------------------------

def _linear_kernel(x_ref, w_ref, b_ref, o_ref, *, relu):
    y = jnp.dot(x_ref[...].astype(jnp.bfloat16), w_ref[...],
                preferred_element_type=jnp.float32)
    y = y + b_ref[...]
    if relu:
        y = jnp.maximum(y, 0.0)
    o_ref[...] = y


def linear(x, w, b, relu=False, block_m=1024):
    # x: (M, K), w: (K, N), b: (N,).  Row-tiled "parallel" grid; a trailing
    # partial block is handled by Pallas boundary clamping (no HBM pad copy).
    M, K = x.shape
    N = w.shape[1]
    bm = M if M <= block_m else block_m
    return pl.pallas_call(
        functools.partial(_linear_kernel, relu=relu),
        out_shape=jax.ShapeDtypeStruct((M, N), jnp.float32),
        grid=(pl.cdiv(M, bm),),
        in_specs=[pl.BlockSpec((bm, K), lambda i: (i, 0)),
                  pl.BlockSpec((K, N), lambda i: (0, 0)),
                  pl.BlockSpec((1, N), lambda i: (0, 0))],
        out_specs=pl.BlockSpec((bm, N), lambda i: (i, 0)),
        compiler_params=pltpu.CompilerParams(
            dimension_semantics=("parallel",)),
    )(x, w.astype(jnp.bfloat16), b.reshape(1, N))


def _translayer_kernel(x_ref, g_ref, b_ref, wqkv_ref, wout_ref, bout_ref,
                       wres_ref, o_ref, *, heads, dim_head, m, l, pad, scale,
                       iters, eps):
    # Fused TransLayer: y = x + to_out(NystromAttention(LayerNorm(x)))
    # x_ref: (n_pad, dim) f32, front-padded with `pad` zero rows.
    f32 = jnp.float32
    bf16 = jnp.bfloat16
    n_pad = x_ref.shape[0]
    dim = heads * dim_head                       # 64
    bd = heads * m                               # 256 = all heads' landmarks
    rk = wres_ref.shape[0]                       # 33
    half = rk // 2

    def mm(a, b2):            # a @ b with f32 accumulation on the MXU
        return lax.dot_general(a, b2, (((1,), (0,)), ((), ())),
                               preferred_element_type=f32)

    def mm_nt(a, b2):         # a @ b.T
        return lax.dot_general(a, b2, (((1,), (1,)), ((), ())),
                               preferred_element_type=f32)

    # ---- LayerNorm (reference pads AFTER the norm -> force pad rows to 0) ----
    x = x_ref[...]
    mu = jnp.mean(x, axis=-1, keepdims=True)
    var = jnp.mean(jnp.square(x - mu), axis=-1, keepdims=True)
    xn = (x - mu) * lax.rsqrt(var + eps) * g_ref[...] + b_ref[...]
    if pad > 0:
        row = lax.broadcasted_iota(jnp.int32, (n_pad, 1), 0)
        xn = jnp.where(row >= pad, xn, 0.0)

    # ---- fused qkv projection (bf16 MXU operands, f32 accumulate) ----
    qkv = mm(xn.astype(bf16), wqkv_ref[...])                 # (n_pad, 3*dim)
    q = qkv[:, :dim] * scale
    k = qkv[:, dim:2 * dim]
    v = qkv[:, 2 * dim:3 * dim]

    # ---- landmark pooling: mean over groups of l consecutive tokens ----
    gi = lax.broadcasted_iota(jnp.int32, (m, n_pad), 0)
    gj = lax.broadcasted_iota(jnp.int32, (m, n_pad), 1)
    G = jnp.where((gj >= gi * l) & (gj < (gi + 1) * l),
                  jnp.float32(1.0 / l), jnp.float32(0.0))
    ql = mm(G, q)                                            # (m, dim)
    kl = mm(G, k)                                            # (m, dim)

    # ---- head-batched block structure: row r = h*m + j ; column d -> head d//dh ----
    rhead = lax.broadcasted_iota(jnp.int32, (bd, dim), 0) // m
    chead = lax.broadcasted_iota(jnp.int32, (bd, dim), 1) // dim_head
    head_mask = rhead == chead                               # (bd, dim) 32x8 blocks
    ql_bd = jnp.where(head_mask, jnp.concatenate([ql] * heads, axis=0), 0.0)
    kl_bd = jnp.where(head_mask, jnp.concatenate([kl] * heads, axis=0), 0.0)

    # ---- attn2 for all heads at once (block-diagonal 256x256 softmax) ----
    ib = lax.broadcasted_iota(jnp.int32, (bd, bd), 0)
    jb = lax.broadcasted_iota(jnp.int32, (bd, bd), 1)
    same_blk = (ib // m) == (jb // m)
    s2 = mm_nt(ql_bd, kl_bd)                                 # off-block entries == 0
    s2 = jnp.where(same_blk, s2, jnp.float32(-1e30))
    e2 = jnp.exp(s2 - jnp.max(s2, axis=-1, keepdims=True))
    a2 = e2 * pl.reciprocal(jnp.sum(e2, axis=-1, keepdims=True), approx=True)

    # ---- shared Moore-Penrose pinv (Newton-Schulz) of the block-diag attn2 ----
    aabs = jnp.abs(a2)
    col_max = jnp.max(jnp.sum(aabs, axis=1, keepdims=True), axis=0, keepdims=True)
    row_max = jnp.max(jnp.sum(aabs, axis=0, keepdims=True), axis=1, keepdims=True)
    inv_denom = 1.0 / (col_max * row_max)   # exact: convergence needs <= 1/(|A|1*|A|inf)
    eye = jnp.where(ib == jb, jnp.float32(1.0), jnp.float32(0.0))
    z = jnp.transpose(a2) * inv_denom
    for _ in range(iters):
        xz = mm(a2, z)
        z = 0.25 * mm(z, 13.0 * eye - mm(xz, 15.0 * eye - mm(xz, 7.0 * eye - xz)))

    # ---- attn3 (landmarks x tokens), head-batched; normalisation folded into attn3@v ----
    k_b = k.astype(bf16)
    v_b = v.astype(bf16)
    s3 = mm_nt(ql_bd.astype(bf16), k_b)                      # (bd, n_pad)
    e3 = jnp.exp(s3 - jnp.max(s3, axis=-1, keepdims=True))
    d3 = jnp.sum(e3, axis=-1, keepdims=True)
    a3v = mm(e3.astype(bf16), v_b) * pl.reciprocal(d3, approx=True)   # (bd, dim)
    a3v = jnp.where(head_mask, a3v, 0.0)          # keep only per-head diag blocks
    w_agg = mm(z, a3v)                            # (bd, dim), block structured, f32

    # ---- attn1 (tokens x landmarks), head-batched.  Each head's softmax runs
    #      over its own m columns; a per-row global max is a valid shift. ----
    s1 = mm_nt(q.astype(bf16), kl_bd.astype(bf16))           # (n_pad, bd)
    e1 = jnp.exp(s1 - jnp.max(s1, axis=-1, keepdims=True))
    e1b = e1.astype(bf16)
    # per-(row, head) softmax denominators via a tiny column->head indicator matmul
    pj = lax.broadcasted_iota(jnp.int32, (bd, heads), 0) // m
    ph = lax.broadcasted_iota(jnp.int32, (bd, heads), 1)
    P = jnp.where(pj == ph, jnp.float32(1.0), jnp.float32(0.0)).astype(bf16)
    inv_seg = pl.reciprocal(mm(e1b, P) + 1e-30, approx=True)  # (n_pad, heads)
    # broadcast each head's reciprocal across its dim_head output columns
    eh = lax.broadcasted_iota(jnp.int32, (heads, dim), 0)
    ed = lax.broadcasted_iota(jnp.int32, (heads, dim), 1) // dim_head
    E = jnp.where(eh == ed, jnp.float32(1.0), jnp.float32(0.0))
    out = mm(e1b, w_agg.astype(bf16)) * mm(inv_seg, E)        # (n_pad, dim)

    # ---- 33-tap depthwise residual conv on v: taps grouped by (offset mod 8),
    #      7 sublane-shifted base slabs + 33 sublane-aligned multiply-adds ----
    w_taps = wres_ref[...]                                    # (rk, dim)
    zpad = jnp.zeros((half, dim), f32)
    v_padded = jnp.concatenate([zpad, v, zpad], axis=0)       # (n_pad + rk - 1, dim)
    for r in range(8):
        base = v_padded if r == 0 else v_padded[r:, :]
        for q8 in range(0, rk - r, 8):
            t = q8 + r
            out = out + w_taps[t:t + 1, :] * base[q8:q8 + n_pad, :]

    # ---- to_out projection + residual add, single lane-dense store ----
    y = mm(out.astype(bf16), wout_ref[...]) + bout_ref[...]
    o_ref[...] = y + x


def _ppeg_kernel(xpad_ref, w_ref, b_ref, o_ref, *, H, W):
    # xpad_ref: (H+6, W+6, C) channels-last, spatially padded by 3 on each side.
    # w_ref: (49, C) -- 7x7/5x5/3x3 depthwise kernels pre-folded into one 7x7.
    xp = xpad_ref[...]
    w = w_ref[...]
    acc = xp[3:3 + H, 3:3 + W, :] + b_ref[...]       # identity + pre-summed bias
    for bb in range(7):
        col = xp[:, bb:bb + W, :]                    # W-shifted slab shared by 7 taps
        for aa in range(7):
            acc = acc + w[aa * 7 + bb:aa * 7 + bb + 1, :] * col[aa:aa + H]
    o_ref[...] = acc


# ------------------------------ model pieces ------------------------------

def trans_layer(x, p):
    # x: (n, DIM)  ->  x + NystromAttention(LayerNorm(x)), all in one kernel.
    n, dim = x.shape
    m = LANDMARKS
    pad = (m - n % m) % m
    n_pad = n + pad
    l = math.ceil(n / m)                 # group size uses the *unpadded* n
    scale = DIM_HEAD ** -0.5

    if pad > 0:   # zero-pad at the *front* of the sequence (F.pad(...,(0,0,pad,0)))
        x_pad = jnp.concatenate([jnp.zeros((pad, dim), x.dtype), x], axis=0)
    else:
        x_pad = x

    attn = p['attn']
    # res_conv weights in lane layout: column h*dim_head+j holds w_res[h, tap]
    w_res_lane = jnp.repeat(attn['w_res'], DIM_HEAD, axis=0).T   # (33, dim)

    kern = functools.partial(
        _translayer_kernel, heads=HEADS, dim_head=DIM_HEAD, m=m, l=l, pad=pad,
        scale=scale, iters=PINV_ITERS, eps=LN_EPS)
    out = pl.pallas_call(
        kern,
        out_shape=jax.ShapeDtypeStruct((n_pad, dim), jnp.float32),
        grid=(1,),
        in_specs=[pl.BlockSpec((n_pad, dim), lambda i: (0, 0)),
                  pl.BlockSpec((1, dim), lambda i: (0, 0)),
                  pl.BlockSpec((1, dim), lambda i: (0, 0)),
                  pl.BlockSpec((dim, 3 * DIM), lambda i: (0, 0)),
                  pl.BlockSpec((DIM, dim), lambda i: (0, 0)),
                  pl.BlockSpec((1, dim), lambda i: (0, 0)),
                  pl.BlockSpec((RES_KERNEL, dim), lambda i: (0, 0))],
        out_specs=pl.BlockSpec((n_pad, dim), lambda i: (0, 0)),
        compiler_params=pltpu.CompilerParams(
            dimension_semantics=("arbitrary",),
            vmem_limit_bytes=_vmem_limit_bytes()),
    )(x_pad,
      p['norm_g'].reshape(1, dim), p['norm_b'].reshape(1, dim),
      attn['w_qkv'].astype(jnp.bfloat16),
      attn['w_out'].astype(jnp.bfloat16),
      attn['b_out'].reshape(1, dim),
      w_res_lane)
    return out[pad:]                      # == x + attn_out[-n:]


def ppeg(x, H, W, p):
    # x: (H*W+1, C), cls token first
    cls_tok = x[:1]
    feat = x[1:]
    C = x.shape[1]
    cnn = feat.reshape(H, W, C)                     # channels-last HWC
    xpad = jnp.pad(cnn, ((3, 3), (3, 3), (0, 0)))
    # Fold the three depthwise convs (common center) into ONE 7x7 kernel and
    # pre-sum the three biases -> single bias add and 49 taps in the kernel.
    w7 = p['w7'][:, 0]                                          # (C, 7, 7)
    w5 = jnp.pad(p['w5'][:, 0], ((0, 0), (1, 1), (1, 1)))
    w3 = jnp.pad(p['w3'][:, 0], ((0, 0), (2, 2), (2, 2)))
    wtot = (w7 + w5 + w3).reshape(C, 49).T                      # (49, C)
    bias = (p['b7'] + p['b5'] + p['b3']).reshape(1, C)
    out = pl.pallas_call(
        functools.partial(_ppeg_kernel, H=H, W=W),
        out_shape=jax.ShapeDtypeStruct((H, W, C), jnp.float32),
        grid=(1,),
        in_specs=[pl.BlockSpec((H + 6, W + 6, C), lambda i: (0, 0, 0)),
                  pl.BlockSpec((49, C), lambda i: (0, 0)),
                  pl.BlockSpec((1, C), lambda i: (0, 0))],
        out_specs=pl.BlockSpec((H, W, C), lambda i: (0, 0, 0)),
    )(xpad, wtot, bias)
    return jnp.concatenate([cls_tok, out.reshape(H * W, C)], axis=0)


def transmil_forward(h, params):
    # h: (N, NDIM)
    N = h.shape[0]
    x = linear(h, params['fc1_w'], params['fc1_b'], relu=True)   # (N, DIM)
    _H = _W = int(math.ceil(math.sqrt(N)))
    add = _H * _W - N
    if add > 0:
        x = jnp.concatenate([x, x[:add]], axis=0)
    x = jnp.concatenate([params['cls_token'].reshape(1, DIM), x], axis=0)
    x = trans_layer(x, params['layer1'])
    x = ppeg(x, _H, _W, params['ppeg'])
    x = trans_layer(x, params['layer2'])
    # Only the cls row feeds the classifier -> LayerNorm + fc2 on (1, DIM) in
    # plain jnp (a full-sequence kernel here would be pure overhead).
    h0 = x[:1]
    mu = jnp.mean(h0, axis=-1, keepdims=True)
    var = jnp.mean(jnp.square(h0 - mu), axis=-1, keepdims=True)
    h0 = (h0 - mu) * lax.rsqrt(var + LN_EPS) * params['norm_g'] + params['norm_b']
    logits = h0 @ params['fc2_w'] + params['fc2_b']              # (1, n_classes)
    y_prob = jax.nn.softmax(logits, axis=-1)
    y_hat = jnp.argmax(logits, axis=-1)
    return {'logits': logits, 'Y_prob': y_prob, 'Y_hat': y_hat}


# ----------------------------- deterministic init -----------------------------

def init_params(key):
    def nrm(k, shape, s=0.1):
        return (s * jax.random.normal(k, shape)).astype(jnp.float32)

    def attn_params(k):
        k1, k2, k3, k4 = jax.random.split(k, 4)
        return {
            'w_qkv': nrm(k1, (DIM, 3 * HEADS * DIM_HEAD)),      # to_qkv (no bias)
            'w_out': nrm(k2, (HEADS * DIM_HEAD, DIM)),          # to_out Linear
            'b_out': nrm(k3, (DIM,), 0.01),
            'w_res': nrm(k4, (HEADS, RES_KERNEL)),              # res_conv (33,1), no bias
        }

    def layer_params(k):
        k1, k2, k3 = jax.random.split(k, 3)
        return {
            'norm_g': (1.0 + 0.01 * jax.random.normal(k1, (DIM,))).astype(jnp.float32),
            'norm_b': nrm(k2, (DIM,), 0.01),
            'attn': attn_params(k3),
        }

    ks = jax.random.split(key, 12)
    ppeg_p = {
        'w7': nrm(ks[0], (DIM, 1, 7, 7)), 'b7': nrm(ks[1], (DIM,), 0.01),
        'w5': nrm(ks[2], (DIM, 1, 5, 5)), 'b5': nrm(ks[3], (DIM,), 0.01),
        'w3': nrm(ks[4], (DIM, 1, 3, 3)), 'b3': nrm(ks[5], (DIM,), 0.01),
    }
    return {
        'fc1_w': nrm(ks[6], (NDIM, DIM)),
        'fc1_b': nrm(ks[7], (DIM,), 0.01),
        'cls_token': jax.random.normal(ks[8], (1, 1, DIM)).astype(jnp.float32),
        'layer1': layer_params(ks[9]),
        'layer2': layer_params(ks[10]),
        'ppeg': ppeg_p,
        'norm_g': jnp.ones((DIM,), jnp.float32),
        'norm_b': jnp.zeros((DIM,), jnp.float32),
        'fc2_w': nrm(ks[11], (DIM, N_CLASSES)),
        'fc2_b': jnp.zeros((N_CLASSES,), jnp.float32),
    }


if __name__ == "__main__":
    key = jax.random.PRNGKey(0)
    kp, kx = jax.random.split(key)
    params = init_params(kp)

    N = 60                              # bag of 60 instances, feature dim 128
    h_in = jax.random.normal(kx, (N, NDIM), dtype=jnp.float32)

    out = transmil_forward(h_in, params)
    out = jax.block_until_ready(out)

    assert out['logits'].shape == (1, N_CLASSES)
    assert out['Y_prob'].shape == (1, N_CLASSES)
    assert out['Y_hat'].shape == (1,)
    assert bool(jnp.all(jnp.isfinite(out['logits'])))
    print("KERNEL_OK")
</pallas_src>

<mosaic_0001>
module attributes {stable_mosaic.version = 11 : i64} {
  func.func @_linear_kernel(%arg0: i32, %arg1: memref<60x128xf32, #tpu.memory_space<vmem>>, %arg2: memref<128x64xbf16, #tpu.memory_space<vmem>>, %arg3: memref<1x64xf32, #tpu.memory_space<vmem>>, %arg4: memref<60x64xf32, #tpu.memory_space<vmem>>) attributes {dimension_semantics = [#tpu.dimension_semantics<parallel>], iteration_bounds = array<i64: 1>, scalar_prefetch = 0 : i64, scratch_operands = 0 : i64, tpu.core_type = #tpu.core_type<tc>, window_params = [{transform_indices = @transform_0, window_bounds = array<i64: 60, 128>}, {pipeline_mode = #tpu.pipeline_mode<synchronous>, transform_indices = @transform_1, window_bounds = array<i64: 128, 64>}, {pipeline_mode = #tpu.pipeline_mode<synchronous>, transform_indices = @transform_2, window_bounds = array<i64: 1, 64>}, {transform_indices = @transform_3, window_bounds = array<i64: 60, 64>}]} {
    %c0 = arith.constant 0 : index
    %c0_0 = arith.constant 0 : index
    %0 = vector.load %arg1[%c0, %c0_0] : memref<60x128xf32, #tpu.memory_space<vmem>>, vector<60x128xf32>
    %1 = arith.truncf %0 : vector<60x128xf32> to vector<60x128xbf16>
    %c0_1 = arith.constant 0 : index
    %c0_2 = arith.constant 0 : index
    %2 = vector.load %arg2[%c0_1, %c0_2] : memref<128x64xbf16, #tpu.memory_space<vmem>>, vector<128x64xbf16>
    %cst = arith.constant dense<0.000000e+00> : vector<60x64xf32>
    %3 = tpu.matmul %1, %2, %cst {dimension_numbers = #tpu.dot_dimension_numbers<[1], [0], [0], [1], [0, 0, 1, 1], [], []>} : vector<60x128xbf16>, vector<128x64xbf16>, vector<60x64xf32> -> vector<60x64xf32>
    %c0_3 = arith.constant 0 : index
    %c0_4 = arith.constant 0 : index
    %4 = vector.load %arg3[%c0_3, %c0_4] : memref<1x64xf32, #tpu.memory_space<vmem>>, vector<1x64xf32>
    %5 = vector.broadcast %4 : vector<1x64xf32> to vector<60x64xf32>
    %6 = arith.addf %3, %5 : vector<60x64xf32>
    %cst_5 = arith.constant 0.000000e+00 : f32
    %7 = vector.broadcast %cst_5 : f32 to vector<60x64xf32>
    %8 = arith.maximumf %6, %7 : vector<60x64xf32>
    %c0_6 = arith.constant 0 : index
    %c0_7 = arith.constant 0 : index
    %9 = vector.load %arg4[%c0_6, %c0_7] : memref<60x64xf32, #tpu.memory_space<vmem>>, vector<60x64xf32>
    tpu.vector_store %arg4[%c0_6, %c0_7], %8 {strides = array<i32>} : memref<60x64xf32, #tpu.memory_space<vmem>>, vector<60x64xf32>,
    return
  }
  func.func @transform_0(%arg0: i32) -> (i32, i32) {
    %c0_i32 = arith.constant 0 : i32
    %c0_i32_0 = arith.constant 0 : i32
    return %arg0, %c0_i32 : i32, i32
  }
  func.func @transform_1(%arg0: i32) -> (i32, i32) {
    %c0_i32 = arith.constant 0 : i32
    %c0_i32_0 = arith.constant 0 : i32
    %c0_i32_1 = arith.constant 0 : i32
    return %c0_i32, %c0_i32_0 : i32, i32
  }
  func.func @transform_2(%arg0: i32) -> (i32, i32) {
    %c0_i32 = arith.constant 0 : i32
    %c0_i32_0 = arith.constant 0 : i32
    %c0_i32_1 = arith.constant 0 : i32
    return %c0_i32, %c0_i32_0 : i32, i32
  }
  func.func @transform_3(%arg0: i32) -> (i32, i32) {
    %c0_i32 = arith.constant 0 : i32
    %c0_i32_0 = arith.constant 0 : i32
    return %arg0, %c0_i32 : i32, i32
  }
}

</mosaic_0001>

<bundles_post_ra>
// kernel: tpu_custom_call.1
= control target key start
LH: loop header
LB: loop body
LE: loop exit
PB: predicated region body
PF: predicated region fallthrough
CT: control target
= control target key end

     0   :  { %s338_s0 = inlined_call_operand.vmem [shape: f32[60,128], index: 0, kind: input, shape index: {}]   ;;  %s339_s1 = inlined_call_operand.vmem [shape: bf16[128,64], index: 1, kind: input, shape index: {}]   ;;  %s340_s2 = inlined_call_operand.vmem [shape: f32[1,64], index: 2, kind: input, shape index: {}]   ;;  %s341_s3 = inlined_call_operand.hbm [shape: f32[60,64], index: 3, kind: output, shape index: {}]  }
   0x1   :  { %v199_v0 = vld [vmem:[%s339_s1 + $0x38] sm:$0xff]  ;;  %v198_v1 = vld [vmem:[%s339_s1 + $0x30] sm:$0xff]  ;;  %v197_v2 = vld [vmem:[%s339_s1 + $0x28] sm:$0xff] }
   0x2   :  { %95 = vmatpush.bf16.msra.mxu0 %v199_v0  ;;  %200 = vmatpush.bf16.msra.mxu1 %v199_v0 }
   0x3   :  { %201 = vmatpush.bf16.msra.mxu2 %v199_v0  ;;  %202 = vmatpush.bf16.msra.mxu3 %v199_v0 }
   0x6   :  { %96 = vmatpush.bf16.msra.mxu0 %v198_v1  ;;  %203 = vmatpush.bf16.msra.mxu1 %v198_v1 }
   0x7   :  { %8 = vsyncpa [#allocation3], 0  ;;  %204 = vmatpush.bf16.msra.mxu2 %v198_v1  ;;  %205 = vmatpush.bf16.msra.mxu3 %v198_v1  ;;  %v196_v3 = vld [vmem:[%s339_s1 + $0x20] sm:$0xff]  ;;  %v195_v4 = vld [vmem:[%s339_s1 + $0x18] sm:$0xff]  ;;  %vm132_vm0 = vcmask 523264   ;;  %s148_s20 = sshll.u32 %s341_s3, 4  ;;  %s149_s20 = int_to_ptr.hbm [resolvable:$true] %s148_s20 }
   0x8   :  { %v194_v5 = vld [vmem:[%s339_s1 + $0x10] sm:$0xff]  ;;  %v193_v6 = vld [vmem:[%s339_s1 + $0x8] sm:$0xff]  ;;  %v192_v7 = vld [vmem:[%s339_s1] sm:$0xff]  ;;  %vm140_vm1 = vcmask 519168   ;;  %s255_s21 = smov 128   ;;  %s256_s22 = smov 8  }
   0x9   :  { %v15_v8 = vld [vmem:[%s338_s0] sm:$0xff]  ;;  %v16_v9 = vld [vmem:[%s338_s0 + $0x8] sm:$0xff]  ;;  %v17_v10 = vld [vmem:[%s338_s0 + $0x10] sm:$0xff] }
   0xa   :  { %97 = vmatpush.bf16.msra.mxu0 %v197_v2  ;;  %206 = vmatpush.bf16.msra.mxu1 %v197_v2  ;;  %v18_v11 = vld [vmem:[%s338_s0 + $0x18] sm:$0xff]  ;;  %v19_v12 = vld [vmem:[%s338_s0 + $0x20] sm:$0xff]  ;;  %v20_v13 = vld [vmem:[%s338_s0 + $0x28] sm:$0xff]  ;;  %v23_v16 = vpack.c.bf16 %v16_v9, %v15_v8 }
   0xb   :  { %207 = vmatpush.bf16.msra.mxu2 %v197_v2  ;;  %208 = vmatpush.bf16.msra.mxu3 %v197_v2  ;;  %v21_v14 = vld [vmem:[%s338_s0 + $0x30] sm:$0xff]  ;;  %v22_v15 = vld [vmem:[%s338_s0 + $0x38] sm:$0xf]  ;;  %v24_v17 = vpack.c.bf16 %v18_v11, %v17_v10  ;;  %v25_v18 = vpack.c.bf16 %v20_v13, %v19_v12  ;;  %v227_v20 = vld [vmem:[%s340_s2] ss:$0 sm:$0xff]  ;;  %s254_s0 = smov [#allocation2]  }
   0xc   :  { %v26_v19 = vpack.c.bf16 %v22_v15, %v21_v14  ;;  %s146_s2 = sshll.u32 %s254_s0, 4  ;;  %s147_s2 = int_to_ptr.vmem [resolvable:$true] %s146_s2 }
   0xe   :  { %98 = vmatpush.bf16.msra.mxu0 %v196_v3  ;;  %209 = vmatpush.bf16.msra.mxu1 %v196_v3 }
   0xf   :  { %210 = vmatpush.bf16.msra.mxu2 %v196_v3  ;;  %211 = vmatpush.bf16.msra.mxu3 %v196_v3 }
  0x12   :  { %99 = vmatpush.bf16.msra.mxu0 %v195_v4  ;;  %212 = vmatpush.bf16.msra.mxu1 %v195_v4 }
  0x13   :  { %213 = vmatpush.bf16.msra.mxu2 %v195_v4  ;;  %214 = vmatpush.bf16.msra.mxu3 %v195_v4 }
  0x16   :  { %100 = vmatpush.bf16.msra.mxu0 %v194_v5  ;;  %215 = vmatpush.bf16.msra.mxu1 %v194_v5 }
  0x17   :  { %216 = vmatpush.bf16.msra.mxu2 %v194_v5  ;;  %217 = vmatpush.bf16.msra.mxu3 %v194_v5 }
  0x1a   :  { %101 = vmatpush.bf16.msra.mxu0 %v193_v6  ;;  %218 = vmatpush.bf16.msra.mxu1 %v193_v6 }
  0x1b   :  { %219 = vmatpush.bf16.msra.mxu2 %v193_v6  ;;  %220 = vmatpush.bf16.msra.mxu3 %v193_v6 }
  0x1e   :  { %102 = vmatpush.bf16.msra.mxu0 %v192_v7  ;;  %221 = vmatpush.bf16.msra.mxu1 %v192_v7 }
  0x1f   :  { %222 = vmatpush.bf16.msra.mxu2 %v192_v7  ;;  %223 = vmatpush.bf16.msra.mxu3 %v192_v7 }
  0x21   :  { %103 = vmatmul.bf16.vlgmr.msra.gmra.mxu0 %v23_v16  ;;  %108 = vmatmul.bf16.vlgmr.msra.gmra.mxu1 %v24_v17 }
  0x22   :  { %113 = vmatmul.bf16.vlgmr.msra.gmra.mxu2 %v25_v18  ;;  %118 = vmatmul.bf16.vlgmr.msra.gmra.mxu3 %v26_v19 }
  0x9e   :  { %v104_v21 = vpop.f32.mrf.mxu0  ;;  %v109_v22 = vpop.f32.mrf.mxu1 }
  0x9f   :  { %v105_v23 = vadd.f32 %v227_v20, %v104_v21  ;;  %v110_v24 = vadd.f32 %v227_v20, %v109_v22 }
  0xa1   :  { %v124_v25 = vmax.f32 %v105_v23, 0.0  ;;  %v126_v26 = vmax.f32 %v110_v24, 0.0 }
  0xa3   :  { %133 = vst.msk [vmem:[#allocation2] sm:$0xff] %vm132_vm0, %v124_v25 }
  0xa4   :  { %135 = vst.msk [vmem:[#allocation2 + $0x10] sm:$0xff] %vm132_vm0, %v126_v26 }
  0xa5   :  { %v114_v27 = vpop.f32.mrf.mxu2  ;;  %v119_v28 = vpop.f32.mrf.mxu3 }
  0xa6   :  { %v115_v29 = vadd.f32 %v227_v20, %v114_v27  ;;  %v120_v30 = vadd.f32 %v227_v20, %v119_v28  ;;  %v106_v31 = vpop.f32.mrf.mxu0  ;;  %v111_v32 = vpop.f32.mrf.mxu1 }
  0xa7   :  { %v107_v33 = vadd.f32 %v227_v20, %v106_v31  ;;  %v112_v34 = vadd.f32 %v227_v20, %v111_v32 }
  0xa8   :  { %v128_v35 = vmax.f32 %v115_v29, 0.0  ;;  %v130_v36 = vmax.f32 %v120_v30, 0.0 }
  0xa9   :  { %v125_v37 = vmax.f32 %v107_v33, 0.0  ;;  %v127_v38 = vmax.f32 %v112_v34, 0.0 }
  0xaa   :  { %137 = vst.msk [vmem:[#allocation2 + $0x20] sm:$0xff] %vm132_vm0, %v128_v35 }
  0xab   :  { %139 = vst.msk [vmem:[#allocation2 + $0x30] sm:$0xff] %vm132_vm0, %v130_v36 }
  0xac   :  { %134 = vst.msk [vmem:[#allocation2 + $0x8] sm:$0xff] %vm132_vm0, %v125_v37 }
  0xad   :  { %136 = vst.msk [vmem:[#allocation2 + $0x18] sm:$0xff] %vm132_vm0, %v127_v38  ;;  %v116_v39 = vpop.f32.mrf.mxu2  ;;  %v121_v40 = vpop.f32.mrf.mxu3 }
  0xae   :  { %v117_v41 = vadd.f32 %v227_v20, %v116_v39  ;;  %v122_v42 = vadd.f32 %v227_v20, %v121_v40 }
  0xb0   :  { %v129_v43 = vmax.f32 %v117_v41, 0.0  ;;  %v131_v44 = vmax.f32 %v122_v42, 0.0 }
  0xb2   :  { %138 = vst.msk [vmem:[#allocation2 + $0x28] sm:$0xff] %vm132_vm0, %v129_v43 }
  0xb3   :  { %141 = vst.msk [vmem:[#allocation2 + $0x38] sm:$0xf] %vm140_vm1, %v131_v44 }
  0xb4   :  { %154 = dma.vmem_to_hbm [thread:$0]  %s147_s2, 1024, %s149_s20, [#allocation3], %s255_s21, %s255_s21, %s256_s22  }
  0xb5   :  { %252 = dma.done.wait [#allocation3], 1024  }
  0xb6   :  { %253 = vsyncadd [#allocation3], 4294966272 }
  0xb7   :  { %159 = vsyncpa [#allocation3], 1 }

</bundles_post_ra>
